<compile_context>
chip_gen: v7x
topology: tpu7x:2x2x1
jax: 0.10.0
libtpu: 0.0.40
codegen_flags: <defaults>
</compile_context>

<pallas_src>
import math

import jax
import jax.numpy as jnp
from jax.experimental import pallas as pl
from jax.experimental.pallas import tpu as pltpu


def _mlp_kernel(x_ref, w1_ref, b1_ref, w2_ref, b2_ref, o_ref):
    # x arrives as f32 straight from HBM; cast to bf16 only for the MXU.
    x = x_ref[...].astype(jnp.bfloat16)                               # (tm, F_in)
    h = jnp.dot(x, w1_ref[...], preferred_element_type=jnp.float32)   # (tm, F_hid) f32
    h = jnp.maximum(h + b1_ref[...], 0.0)                             # bias + ReLU (VPU)
    out = jnp.dot(h.astype(jnp.bfloat16), w2_ref[...],
                  preferred_element_type=jnp.float32)                 # (tm, F_out) f32
    o_ref[...] = (out + b2_ref[...]).astype(o_ref.dtype)


def _round_up(a, b):
    return ((a + b - 1) // b) * b


def _choose_tm(n, tm_max=2048):
    """Row tile: one grid step when n <= tm_max, otherwise balanced steps.

    A single step avoids per-step (~0.35 us) overhead on single-TC chips
    (v5e/v6e) and for small N on v7x; multiple balanced, large steps only
    appear for big N where the v7x megacore split actually pays off.
    """
    if n <= 8:
        return n                          # block dim equals full array dim
    num_steps = -(-n // tm_max)           # cdiv
    tm = _round_up(-(-n // num_steps), 8)
    return min(tm, _round_up(n, 8))


def classifier_forward(x, w1, b1, w2, b2, *, tm_max=2048):
    """x: [N, F_in] f32. w1: [F_in, F_hid], w2: [F_hid, F_out]. Returns [N, F_out] f32."""
    n, f_in = x.shape
    f_hid = w1.shape[1]
    f_out = w2.shape[1]

    tm = _choose_tm(n, tm_max=tm_max)
    grid = (-(-n // tm),)                 # cdiv grid; ragged tail stores are dropped

    # Weights/biases are tiny and grid-invariant; cast MXU operands to bf16 once.
    w1_b = w1.astype(jnp.bfloat16)
    w2_b = w2.astype(jnp.bfloat16)
    b1_2d = b1.reshape(1, f_hid).astype(jnp.float32)
    b2_2d = b2.reshape(1, f_out).astype(jnp.float32)

    return pl.pallas_call(
        _mlp_kernel,
        out_shape=jax.ShapeDtypeStruct((n, f_out), jnp.float32),
        grid_spec=pltpu.PrefetchScalarGridSpec(
            num_scalar_prefetch=0,
            grid=grid,
            in_specs=[
                pl.BlockSpec((tm, f_in), lambda i: (i, 0)),      # x row tile (f32)
                pl.BlockSpec((f_in, f_hid), lambda i: (0, 0)),   # W1 (grid-invariant)
                pl.BlockSpec((1, f_hid), lambda i: (0, 0)),      # b1
                pl.BlockSpec((f_hid, f_out), lambda i: (0, 0)),  # W2 (grid-invariant)
                pl.BlockSpec((1, f_out), lambda i: (0, 0)),      # b2
            ],
            # Narrow output block: F_out equals the full array dim, so the
            # (8,128) constraint is satisfied; masked vst cost is hidden
            # under DMA in this HBM-bound kernel.
            out_specs=pl.BlockSpec((tm, f_out), lambda i: (i, 0)),
        ),
        compiler_params=pltpu.CompilerParams(
            dimension_semantics=("parallel",),
        ),
    )(x, w1_b, b1_2d, w2_b, b2_2d)


def init_linear_params(key, fan_in, fan_out):
    """Deterministic init mirroring torch.nn.Linear default (uniform +-1/sqrt(fan_in))."""
    k_w, k_b = jax.random.split(key)
    bound = 1.0 / math.sqrt(fan_in)
    # Stored transposed relative to torch ([in, out]) so the kernel does x @ W.
    w = jax.random.uniform(k_w, (fan_in, fan_out), jnp.float32, -bound, bound)
    b = jax.random.uniform(k_b, (fan_out,), jnp.float32, -bound, bound)
    return w, b


if __name__ == "__main__":
    # Shapes implied by the module:
    #   num_feats = layer_2_feats * 2  -> pick layer_2_feats = 32 => F_IN = 64
    #   cls_feats = 128 (hidden), out_features = 2
    N = 16           # number of samples (e.g. edges to classify); arbitrary N supported
    F_IN = 64
    F_HID = 128
    F_OUT = 2

    key = jax.random.PRNGKey(0)
    kx, k1, k2 = jax.random.split(key, 3)

    x = jax.random.normal(kx, (N, F_IN), jnp.float32)
    w1, b1 = init_linear_params(k1, F_IN, F_HID)
    w2, b2 = init_linear_params(k2, F_HID, F_OUT)

    out = classifier_forward(x, w1, b1, w2, b2)
    out = jax.block_until_ready(out)
    assert out.shape == (N, F_OUT)

    # Reference with the same bf16 operand rounding + f32 accumulation.
    xb = x.astype(jnp.bfloat16).astype(jnp.float32)
    w1b = w1.astype(jnp.bfloat16).astype(jnp.float32)
    w2b = w2.astype(jnp.bfloat16).astype(jnp.float32)
    h_ref = jnp.maximum(xb @ w1b + b1, 0.0)
    ref_bf16 = h_ref.astype(jnp.bfloat16).astype(jnp.float32) @ w2b + b2
    assert jnp.allclose(out, ref_bf16, atol=2e-3, rtol=2e-3), "mismatch vs bf16 reference"

    # Loose sanity check against the pure-f32 torch-equivalent MLP.
    ref_f32 = jnp.maximum(x @ w1 + b1, 0.0) @ w2 + b2
    assert jnp.allclose(out, ref_f32, atol=5e-2, rtol=5e-2), "mismatch vs f32 reference"

    print("KERNEL_OK")
</pallas_src>

<mosaic_0001>
module attributes {stable_mosaic.version = 11 : i64} {
  func.func @_mlp_kernel(%arg0: i32, %arg1: memref<16x64xf32, #tpu.memory_space<vmem>>, %arg2: memref<64x128xbf16, #tpu.memory_space<vmem>>, %arg3: memref<1x128xf32, #tpu.memory_space<vmem>>, %arg4: memref<128x2xbf16, #tpu.memory_space<vmem>>, %arg5: memref<1x2xf32, #tpu.memory_space<vmem>>, %arg6: memref<16x2xf32, #tpu.memory_space<vmem>>) attributes {dimension_semantics = [#tpu.dimension_semantics<parallel>], iteration_bounds = array<i64: 1>, scalar_prefetch = 0 : i64, scratch_operands = 0 : i64, tpu.core_type = #tpu.core_type<tc>, window_params = [{transform_indices = @transform_0, window_bounds = array<i64: 16, 64>}, {pipeline_mode = #tpu.pipeline_mode<synchronous>, transform_indices = @transform_1, window_bounds = array<i64: 64, 128>}, {pipeline_mode = #tpu.pipeline_mode<synchronous>, transform_indices = @transform_2, window_bounds = array<i64: 1, 128>}, {pipeline_mode = #tpu.pipeline_mode<synchronous>, transform_indices = @transform_3, window_bounds = array<i64: 128, 2>}, {pipeline_mode = #tpu.pipeline_mode<synchronous>, transform_indices = @transform_4, window_bounds = array<i64: 1, 2>}, {transform_indices = @transform_5, window_bounds = array<i64: 16, 2>}]} {
    %c0 = arith.constant 0 : index
    %c0_0 = arith.constant 0 : index
    %0 = vector.load %arg1[%c0, %c0_0] : memref<16x64xf32, #tpu.memory_space<vmem>>, vector<16x64xf32>
    %1 = arith.truncf %0 : vector<16x64xf32> to vector<16x64xbf16>
    %c0_1 = arith.constant 0 : index
    %c0_2 = arith.constant 0 : index
    %2 = vector.load %arg2[%c0_1, %c0_2] : memref<64x128xbf16, #tpu.memory_space<vmem>>, vector<64x128xbf16>
    %cst = arith.constant dense<0.000000e+00> : vector<16x128xf32>
    %3 = tpu.matmul %1, %2, %cst {dimension_numbers = #tpu.dot_dimension_numbers<[1], [0], [0], [1], [0, 0, 1, 1], [], []>} : vector<16x64xbf16>, vector<64x128xbf16>, vector<16x128xf32> -> vector<16x128xf32>
    %c0_3 = arith.constant 0 : index
    %c0_4 = arith.constant 0 : index
    %4 = vector.load %arg3[%c0_3, %c0_4] : memref<1x128xf32, #tpu.memory_space<vmem>>, vector<1x128xf32>
    %5 = vector.broadcast %4 : vector<1x128xf32> to vector<16x128xf32>
    %6 = arith.addf %3, %5 : vector<16x128xf32>
    %cst_5 = arith.constant 0.000000e+00 : f32
    %7 = vector.broadcast %cst_5 : f32 to vector<16x128xf32>
    %8 = arith.maximumf %6, %7 : vector<16x128xf32>
    %9 = arith.truncf %8 : vector<16x128xf32> to vector<16x128xbf16>
    %c0_6 = arith.constant 0 : index
    %c0_7 = arith.constant 0 : index
    %10 = vector.load %arg4[%c0_6, %c0_7] : memref<128x2xbf16, #tpu.memory_space<vmem>>, vector<128x2xbf16>
    %cst_8 = arith.constant dense<0.000000e+00> : vector<16x2xf32>
    %11 = tpu.matmul %9, %10, %cst_8 {dimension_numbers = #tpu.dot_dimension_numbers<[1], [0], [0], [1], [0, 0, 1, 1], [], []>} : vector<16x128xbf16>, vector<128x2xbf16>, vector<16x2xf32> -> vector<16x2xf32>
    %c0_9 = arith.constant 0 : index
    %c0_10 = arith.constant 0 : index
    %12 = vector.load %arg5[%c0_9, %c0_10] : memref<1x2xf32, #tpu.memory_space<vmem>>, vector<1x2xf32>
    %13 = vector.broadcast %12 : vector<1x2xf32> to vector<16x2xf32>
    %14 = arith.addf %11, %13 : vector<16x2xf32>
    %c0_11 = arith.constant 0 : index
    %c0_12 = arith.constant 0 : index
    %15 = vector.load %arg6[%c0_11, %c0_12] : memref<16x2xf32, #tpu.memory_space<vmem>>, vector<16x2xf32>
    tpu.vector_store %arg6[%c0_11, %c0_12], %14 {strides = array<i32>} : memref<16x2xf32, #tpu.memory_space<vmem>>, vector<16x2xf32>,
    return
  }
  func.func @transform_0(%arg0: i32) -> (i32, i32) {
    %c0_i32 = arith.constant 0 : i32
    %c0_i32_0 = arith.constant 0 : i32
    return %arg0, %c0_i32 : i32, i32
  }
  func.func @transform_1(%arg0: i32) -> (i32, i32) {
    %c0_i32 = arith.constant 0 : i32
    %c0_i32_0 = arith.constant 0 : i32
    %c0_i32_1 = arith.constant 0 : i32
    return %c0_i32, %c0_i32_0 : i32, i32
  }
  func.func @transform_2(%arg0: i32) -> (i32, i32) {
    %c0_i32 = arith.constant 0 : i32
    %c0_i32_0 = arith.constant 0 : i32
    %c0_i32_1 = arith.constant 0 : i32
    return %c0_i32, %c0_i32_0 : i32, i32
  }
  func.func @transform_3(%arg0: i32) -> (i32, i32) {
    %c0_i32 = arith.constant 0 : i32
    %c0_i32_0 = arith.constant 0 : i32
    %c0_i32_1 = arith.constant 0 : i32
    return %c0_i32, %c0_i32_0 : i32, i32
  }
  func.func @transform_4(%arg0: i32) -> (i32, i32) {
    %c0_i32 = arith.constant 0 : i32
    %c0_i32_0 = arith.constant 0 : i32
    %c0_i32_1 = arith.constant 0 : i32
    return %c0_i32, %c0_i32_0 : i32, i32
  }
  func.func @transform_5(%arg0: i32) -> (i32, i32) {
    %c0_i32 = arith.constant 0 : i32
    %c0_i32_0 = arith.constant 0 : i32
    return %arg0, %c0_i32 : i32, i32
  }
}

</mosaic_0001>

<bundles_post_ra>
// kernel: tpu_custom_call.1
= control target key start
LH: loop header
LB: loop body
LE: loop exit
PB: predicated region body
PF: predicated region fallthrough
CT: control target
= control target key end

     0   :  { %v305_v0 = vmov 0.0   ;;  %vm306_vm0 = vmmov 0   ;;  %vm63_vm1 = vcmask 523264   ;;  %vm223_vm2 = vcmask 15360   ;;  %s391_s1 = inlined_call_operand.vmem [shape: bf16[64,128], index: 1, kind: input, shape index: {}]   ;;  %s392_s3 = inlined_call_operand.vmem [shape: bf16[128,2], index: 3, kind: input, shape index: {}]   ;;  %s393_s0 = inlined_call_operand.vmem [shape: f32[16,64], index: 0, kind: input, shape index: {}]   ;;  %s394_s2 = inlined_call_operand.vmem [shape: f32[1,128], index: 2, kind: input, shape index: {}]   ;;  %s395_s4 = inlined_call_operand.vmem [shape: f32[1,2], index: 4, kind: input, shape index: {}]   ;;  %s396_s5 = inlined_call_operand.vmem [shape: f32[16,2], index: 5, kind: output, shape index: {}]  }
   0x1   :  { %259 = vmatprep.subr.bf16.mxu0 %v305_v0  ;;  %v293_v1 = vld [vmem:[%s391_s1] sm:$0xff]   ;;  %267 = vmatprep.mubr.msk.bf16.mxu0 %vm306_vm0, %v305_v0  ;;  %v294_v2 = vld [vmem:[%s391_s1 + $0x8] sm:$0xff]   ;;  %v295_v4 = vld [vmem:[%s391_s1 + $0x10] sm:$0xff]  }
   0x2   :  { %271 = vmatprep.subr.bf16.mxu1 %v305_v0  ;;  %287 = vmatprep.mubr.msk.bf16.mxu1 %vm306_vm0, %v305_v0  ;;  %v297_v3 = vld [vmem:[%s392_s3] sm:$0xff]   ;;  %v298_v5 = vld [vmem:[%s392_s3 + $0x8] sm:$0xff]   ;;  %v296_v6 = vld [vmem:[%s391_s1 + $0x18] sm:$0xff]  }
   0x3   :  { %260 = vmatpush3.bf16.msra.mxu0 %v293_v1  ;;  %272 = vmatpush3.bf16.msra.mxu1 %v297_v3  ;;  %v21_v7 = vld [vmem:[%s393_s0] sm:$0xff]  ;;  %v22_v8 = vld [vmem:[%s393_s0 + $0x8] sm:$0xff]  ;;  %v299_v9 = vld [vmem:[%s392_s3 + $0x10] sm:$0xff]  }
   0x4   :  { %261 = vmatprep.subr.bf16.mxu0 %v305_v0  ;;  %273 = vmatprep.subr.bf16.mxu1 %v305_v0  ;;  %v23_v10 = vpack.c.bf16 %v22_v8, %v21_v7  ;;  %v300_v11 = vld [vmem:[%s392_s3 + $0x18] sm:$0xff]   ;;  %v301_v12 = vld [vmem:[%s392_s3 + $0x20] sm:$0xff]   ;;  %v302_v13 = vld [vmem:[%s392_s3 + $0x28] sm:$0xff]  }
   0x5   :  { %v303_v14 = vld [vmem:[%s392_s3 + $0x30] sm:$0xff]   ;;  %v304_v15 = vld [vmem:[%s392_s3 + $0x38] sm:$0xff]   ;;  %v230_v16 = vld [vmem:[%s394_s2] ss:$0 sm:$0xff] }
   0x6   :  { %v236_v26 = vld [vmem:[%s395_s4] ss:$0 sm:$0xff] }
   0x7   :  { %262 = vmatpush3.bf16.msra.mxu0 %v294_v2  ;;  %274 = vmatpush3.bf16.msra.mxu1 %v298_v5 }
   0x8   :  { %263 = vmatprep.subr.bf16.mxu0 %v305_v0  ;;  %275 = vmatprep.subr.bf16.mxu1 %v305_v0 }
   0xb   :  { %264 = vmatpush3.bf16.msra.mxu0 %v295_v4  ;;  %276 = vmatpush3.bf16.msra.mxu1 %v299_v9 }
   0xc   :  { %265 = vmatprep.subr.bf16.mxu0 %v305_v0  ;;  %277 = vmatprep.subr.bf16.mxu1 %v305_v0 }
   0xf   :  { %266 = vmatpush3.bf16.msra.mxu0 %v296_v6  ;;  %278 = vmatpush3.bf16.msra.mxu1 %v300_v11 }
  0x10   :  { %279 = vmatprep.subr.bf16.mxu1 %v305_v0 }
  0x12   :  { %268 = vmatmul.mubr.msk.bf16.vlgmr.msra.gmra.mrb[0].mxu0 %vm63_vm1, %v23_v10 }
  0x13   :  { %280 = vmatpush3.bf16.msra.mxu1 %v301_v12 }
  0x14   :  { %281 = vmatprep.subr.bf16.mxu1 %v305_v0 }
  0x17   :  { %282 = vmatpush3.bf16.msra.mxu1 %v302_v13 }
  0x18   :  { %283 = vmatprep.subr.bf16.mxu1 %v305_v0 }
  0x1b   :  { %284 = vmatpush3.bf16.msra.mxu1 %v303_v14 }
  0x1c   :  { %285 = vmatprep.subr.bf16.mxu1 %v305_v0 }
  0x1f   :  { %286 = vmatpush3.bf16.msra.mxu1 %v304_v15 }
  0xe5   :  { %v101_v17 = vpop.f32.mrb[0].mxu0 }
  0xe6   :  { %v102_v18 = vadd.f32 %v230_v16, %v101_v17  ;;  %v269_v19 = vpop.f32.mrb[1].mxu0 }
  0xe7   :  { %v104_v20 = vpop.f32.mrb[2].mxu0 }
  0xe8   :  { %v105_v21 = vadd.f32 %v230_v16, %v104_v20  ;;  %v270_v22 = vpop.f32.mrb[3].mxu0  ;;  %v108_v23 = vmax.f32 %v102_v18, 0.0 }
  0xea   :  { %v109_v24 = vmax.f32 %v105_v21, 0.0 }
  0xec   :  { %v110_v25 = vpack.c.bf16 %v109_v24, %v108_v23 }
  0xee   :  { %288 = vmatmul.mubr.bf16.vlgmr.msra.gmra.mrb[0].mxu1 %v110_v25 }
 0x1c1   :  { %v216_v27 = vpop.f32.mrb[0].mxu1 }
 0x1c2   :  { %v217_v28 = vadd.f32 %v236_v26, %v216_v27  ;;  %v289_v29 = vpop.f32.mrb[1].mxu1 }
 0x1c3   :  { %v219_v30 = vpop.f32.mrb[2].mxu1 }
 0x1c4   :  { %224 = vst.msk [vmem:[%s396_s5] sm:$0xff] %vm223_vm2, %v217_v28  ;;  %v220_v31 = vadd.f32 %v236_v26, %v219_v30  ;;  %v290_v32 = vpop.f32.mrb[3].mxu1 }
 0x1c6   :  { %225 = vst.msk [vmem:[%s396_s5 + $0x8] sm:$0xff] %vm223_vm2, %v220_v31 }

</bundles_post_ra>
